<compile_context>
chip_gen: v5e
topology: v5e:2x2
jax: 0.10.0
libtpu: 0.0.40
codegen_flags: <defaults>
</compile_context>

<pallas_src>
import functools

import jax
import jax.numpy as jnp
from jax.experimental import pallas as pl
from jax.experimental.pallas import tpu as pltpu

_LANE = 128
_SUBLANE = 8
# Only single-buffer the grid-invariant weights once they would waste real
# VMEM; below this the default (well-tested) double-buffered path is used.
_SINGLE_BUFFER_WEIGHTS_BYTES = 4 << 20
# Portable per-step working-set budget (v7x has only 64 MiB VMEM per core).
_VMEM_BUDGET_BYTES = 48 << 20


def _round_up(x, m):
    return (x + m - 1) // m * m


def _mlp_kernel(x_ref, w1_ref, b1_ref, w2_ref, b2_ref, w3_ref, b3_ref, o_ref):
    """One batch tile through the whole MLP (3 matmuls + biases + ReLUs)."""
    f32 = jnp.float32
    x = x_ref[...]  # already in the weight/compute dtype (wrapper casts)

    h1 = jnp.dot(x, w1_ref[...], preferred_element_type=f32)
    h1 = jnp.maximum(h1 + b1_ref[...].astype(f32), 0.0)

    # Feed activations back to the MXU in the weight dtype (bf16 fast path);
    # a no-op cast when everything is f32.
    h2 = jnp.dot(h1.astype(w2_ref.dtype), w2_ref[...], preferred_element_type=f32)
    h2 = jnp.maximum(h2 + b2_ref[...].astype(f32), 0.0)

    out = jnp.dot(h2.astype(w3_ref.dtype), w3_ref[...], preferred_element_type=f32)
    out = out + b3_ref[...].astype(f32)
    o_ref[...] = out.astype(o_ref.dtype)
    # NOTE: h1/h2 are [block_b, hidden_pad] f32 temporaries.  At these sizes
    # they live comfortably in vregs/VMEM; for hidden_dim beyond ~2K f32
    # (~3K bf16) on v7x, add a K-tiled grid axis with a VMEM accumulator
    # (pl.when init/finalize) instead of keeping W2 fully resident.


def _pick_block_b(batch, in_p, h_p, o_p, w_itemsize, out_itemsize):
    """Largest multiple-of-8 batch tile (<= 512) that fits the VMEM budget.

    Prefers >= 2 grid steps so dimension_semantics=("parallel",) can shard the
    batch axis across v7x's two TensorCores.
    """
    if batch <= _SUBLANE:
        cap = _SUBLANE
    else:
        cap = min(512, _round_up((batch + 1) // 2, _SUBLANE))
    weights_bytes = (in_p * h_p + h_p * h_p + h_p * o_p + 2 * h_p + o_p) * w_itemsize
    bb = cap
    while bb > _SUBLANE:
        # double-buffered x/out tiles + f32 h1/h2 intermediates
        acts = bb * (2 * in_p * w_itemsize + 2 * o_p * out_itemsize + 2 * h_p * 4)
        if weights_bytes + acts <= _VMEM_BUDGET_BYTES:
            break
        bb -= _SUBLANE
    return max(bb, _SUBLANE)


@functools.partial(jax.jit, static_argnames=("block_b",))
def simple_nn_forward(x, w1, b1, w2, b2, w3, b3, *, block_b=None):
    """Fused SimpleNN forward: relu(x@w1+b1) -> relu(.@w2+b2) -> .@w3+b3.

    x  : [B, input_dim]
    w1 : [input_dim, hidden_dim]   b1 : [1, hidden_dim]
    w2 : [hidden_dim, hidden_dim]  b2 : [1, hidden_dim]
    w3 : [hidden_dim, output_dim]  b3 : [1, output_dim]

    Weight dtype sets the MXU compute dtype (bf16 weights -> bf16 MXU path);
    accumulation is always f32.  Returns [B, output_dim] in x's dtype.
    """
    batch, input_dim = x.shape
    hidden_dim = w1.shape[1]
    output_dim = w3.shape[1]

    b1 = b1.reshape(1, hidden_dim)
    b2 = b2.reshape(1, hidden_dim)
    b3 = b3.reshape(1, output_dim)

    compute_dtype = w1.dtype
    out_dtype = x.dtype
    w_itemsize = jnp.dtype(compute_dtype).itemsize
    out_itemsize = jnp.dtype(out_dtype).itemsize

    # --- lane-dense padding: every feature dim -> multiple of 128 -----------
    in_p = _round_up(input_dim, _LANE)
    h_p = _round_up(hidden_dim, _LANE)
    o_p = _round_up(output_dim, _LANE)

    def pad2(a, rows, cols):
        return jnp.pad(a, ((0, rows - a.shape[0]), (0, cols - a.shape[1])))

    x_p = pad2(x.astype(compute_dtype), batch, in_p)
    w1_p = pad2(w1.astype(compute_dtype), in_p, h_p)
    w2_p = pad2(w2.astype(compute_dtype), h_p, h_p)
    w3_p = pad2(w3.astype(compute_dtype), h_p, o_p)
    b1_p = pad2(b1.astype(compute_dtype), 1, h_p)
    b2_p = pad2(b2.astype(compute_dtype), 1, h_p)
    b3_p = pad2(b3.astype(compute_dtype), 1, o_p)

    # --- tiling --------------------------------------------------------------
    if block_b is None:
        block_b = _pick_block_b(batch, in_p, h_p, o_p, w_itemsize, out_itemsize)
    block_b = max(_SUBLANE, _round_up(int(block_b), _SUBLANE))
    grid = (pl.cdiv(batch, block_b),)

    # --- specs ---------------------------------------------------------------
    weights_bytes = (in_p * h_p + h_p * h_p + h_p * o_p + 2 * h_p + o_p) * w_itemsize
    w_kwargs = {}
    if weights_bytes >= _SINGLE_BUFFER_WEIGHTS_BYTES and hasattr(pl, "Buffered"):
        # Grid-invariant operands never change blocks: a second pipeline
        # buffer is pure VMEM waste, so request single buffering.
        w_kwargs["pipeline_mode"] = pl.Buffered(1)

    def full_spec(shape):
        return pl.BlockSpec(shape, lambda i: (0, 0), **w_kwargs)

    acts_bytes = block_b * (2 * in_p * w_itemsize + 2 * o_p * out_itemsize + 2 * h_p * 4)
    vmem_limit = int(min(max(2 * (weights_bytes + acts_bytes), 16 << 20), 100 << 20))

    flops = 2 * batch * (in_p * h_p + h_p * h_p + h_p * o_p)
    bytes_accessed = (batch * in_p * w_itemsize
                      + weights_bytes
                      + batch * o_p * out_itemsize)
    cost = pl.CostEstimate(flops=flops, transcendentals=0,
                           bytes_accessed=bytes_accessed)

    out_padded = pl.pallas_call(
        _mlp_kernel,
        out_shape=jax.ShapeDtypeStruct((batch, o_p), out_dtype),
        grid_spec=pltpu.PrefetchScalarGridSpec(
            num_scalar_prefetch=0,
            grid=grid,
            in_specs=[
                # batch tile of activations
                pl.BlockSpec((block_b, in_p), lambda i: (i, 0)),
                # weights / biases: full arrays, grid-invariant
                full_spec((in_p, h_p)),
                full_spec((1, h_p)),
                full_spec((h_p, h_p)),
                full_spec((1, h_p)),
                full_spec((h_p, o_p)),
                full_spec((1, o_p)),
            ],
            out_specs=pl.BlockSpec((block_b, o_p), lambda i: (i, 0)),
        ),
        compiler_params=pltpu.CompilerParams(
            dimension_semantics=("parallel",),
            vmem_limit_bytes=vmem_limit,
        ),
        cost_estimate=cost,
    )(x_p, w1_p, b1_p, w2_p, b2_p, w3_p, b3_p)

    # Slice off the lane padding.
    return out_padded[:, :output_dim]


def init_params(key, input_dim, hidden_dim, output_dim, dtype=jnp.float32):
    """Deterministic parameter init (PyTorch-like uniform fan-in scaling)."""
    ks = jax.random.split(key, 6)

    def linear(kw, kb, fan_in, fan_out):
        bound = 1.0 / jnp.sqrt(fan_in)
        # stored as [in, out] (transposed vs PyTorch's [out, in])
        w = jax.random.uniform(kw, (fan_in, fan_out), dtype, -bound, bound)
        b = jax.random.uniform(kb, (1, fan_out), dtype, -bound, bound)
        return w, b

    w1, b1 = linear(ks[0], ks[1], input_dim, hidden_dim)
    w2, b2 = linear(ks[2], ks[3], hidden_dim, hidden_dim)
    w3, b3 = linear(ks[4], ks[5], hidden_dim, output_dim)
    return w1, b1, w2, b2, w3, b3


if __name__ == "__main__":
    # Small shapes consistent with SimpleNN(input_dim, hidden_dim, output_dim).
    # batch=256 keeps the problem tiny while giving a >=128-row MXU tile and
    # two parallel grid steps (v7x megacore).
    batch, input_dim, hidden_dim, output_dim = 256, 16, 32, 8

    key = jax.random.PRNGKey(0)
    k_x, k_p = jax.random.split(key)

    x = jax.random.normal(k_x, (batch, input_dim), dtype=jnp.float32)
    params = init_params(k_p, input_dim, hidden_dim, output_dim)
    w1, b1, w2, b2, w3, b3 = params

    # Pure-JAX reference (matches the PyTorch forward).
    ref = jnp.maximum(x @ w1 + b1, 0.0)
    ref = jnp.maximum(ref @ w2 + b2, 0.0)
    ref = ref @ w3 + b3

    # f32 path: bit-faithful to the module semantics.
    out = jax.block_until_ready(simple_nn_forward(x, *params))
    assert out.shape == (batch, output_dim), out.shape
    assert jnp.allclose(out, ref, atol=1e-5, rtol=1e-5), "f32 mismatch vs reference"

    # bf16 fast path: bf16 weights/activations on the MXU, f32 accumulation.
    bf16_params = tuple(p.astype(jnp.bfloat16) for p in params)
    out_bf16 = jax.block_until_ready(simple_nn_forward(x, *bf16_params))
    assert out_bf16.shape == (batch, output_dim), out_bf16.shape
    assert jnp.allclose(out_bf16.astype(jnp.float32), ref, atol=0.1, rtol=0.1), \
        "bf16 mismatch vs reference"

    print("KERNEL_OK")
</pallas_src>

<mosaic_0001>
module attributes {stable_mosaic.version = 11 : i64} {
  func.func @_mlp_kernel(%arg0: i32, %arg1: memref<128x128xf32, #tpu.memory_space<vmem>>, %arg2: memref<128x128xf32, #tpu.memory_space<vmem>>, %arg3: memref<1x128xf32, #tpu.memory_space<vmem>>, %arg4: memref<128x128xf32, #tpu.memory_space<vmem>>, %arg5: memref<1x128xf32, #tpu.memory_space<vmem>>, %arg6: memref<128x128xf32, #tpu.memory_space<vmem>>, %arg7: memref<1x128xf32, #tpu.memory_space<vmem>>, %arg8: memref<128x128xf32, #tpu.memory_space<vmem>>) attributes {dimension_semantics = [#tpu.dimension_semantics<parallel>], iteration_bounds = array<i64: 2>, scalar_prefetch = 0 : i64, scratch_operands = 0 : i64, tpu.core_type = #tpu.core_type<tc>, window_params = [{transform_indices = @transform_0, window_bounds = array<i64: 128, 128>}, {pipeline_mode = #tpu.pipeline_mode<synchronous>, transform_indices = @transform_1, window_bounds = array<i64: 128, 128>}, {pipeline_mode = #tpu.pipeline_mode<synchronous>, transform_indices = @transform_2, window_bounds = array<i64: 1, 128>}, {pipeline_mode = #tpu.pipeline_mode<synchronous>, transform_indices = @transform_3, window_bounds = array<i64: 128, 128>}, {pipeline_mode = #tpu.pipeline_mode<synchronous>, transform_indices = @transform_4, window_bounds = array<i64: 1, 128>}, {pipeline_mode = #tpu.pipeline_mode<synchronous>, transform_indices = @transform_5, window_bounds = array<i64: 128, 128>}, {pipeline_mode = #tpu.pipeline_mode<synchronous>, transform_indices = @transform_6, window_bounds = array<i64: 1, 128>}, {transform_indices = @transform_7, window_bounds = array<i64: 128, 128>}]} {
    %c0 = arith.constant 0 : index
    %c0_0 = arith.constant 0 : index
    %0 = vector.load %arg1[%c0, %c0_0] : memref<128x128xf32, #tpu.memory_space<vmem>>, vector<128x128xf32>
    %c0_1 = arith.constant 0 : index
    %c0_2 = arith.constant 0 : index
    %1 = vector.load %arg2[%c0_1, %c0_2] : memref<128x128xf32, #tpu.memory_space<vmem>>, vector<128x128xf32>
    %cst = arith.constant dense<0.000000e+00> : vector<128x128xf32>
    %2 = tpu.matmul %0, %1, %cst {dimension_numbers = #tpu.dot_dimension_numbers<[1], [0], [0], [1], [0, 0, 1, 1], [], []>} : vector<128x128xf32>, vector<128x128xf32>, vector<128x128xf32> -> vector<128x128xf32>
    %c0_3 = arith.constant 0 : index
    %c0_4 = arith.constant 0 : index
    %3 = vector.load %arg3[%c0_3, %c0_4] : memref<1x128xf32, #tpu.memory_space<vmem>>, vector<1x128xf32>
    %4 = vector.broadcast %3 : vector<1x128xf32> to vector<128x128xf32>
    %5 = arith.addf %2, %4 : vector<128x128xf32>
    %cst_5 = arith.constant 0.000000e+00 : f32
    %6 = vector.broadcast %cst_5 : f32 to vector<128x128xf32>
    %7 = arith.maximumf %5, %6 : vector<128x128xf32>
    %c0_6 = arith.constant 0 : index
    %c0_7 = arith.constant 0 : index
    %8 = vector.load %arg4[%c0_6, %c0_7] : memref<128x128xf32, #tpu.memory_space<vmem>>, vector<128x128xf32>
    %cst_8 = arith.constant dense<0.000000e+00> : vector<128x128xf32>
    %9 = tpu.matmul %7, %8, %cst_8 {dimension_numbers = #tpu.dot_dimension_numbers<[1], [0], [0], [1], [0, 0, 1, 1], [], []>} : vector<128x128xf32>, vector<128x128xf32>, vector<128x128xf32> -> vector<128x128xf32>
    %c0_9 = arith.constant 0 : index
    %c0_10 = arith.constant 0 : index
    %10 = vector.load %arg5[%c0_9, %c0_10] : memref<1x128xf32, #tpu.memory_space<vmem>>, vector<1x128xf32>
    %11 = vector.broadcast %10 : vector<1x128xf32> to vector<128x128xf32>
    %12 = arith.addf %9, %11 : vector<128x128xf32>
    %cst_11 = arith.constant 0.000000e+00 : f32
    %13 = vector.broadcast %cst_11 : f32 to vector<128x128xf32>
    %14 = arith.maximumf %12, %13 : vector<128x128xf32>
    %c0_12 = arith.constant 0 : index
    %c0_13 = arith.constant 0 : index
    %15 = vector.load %arg6[%c0_12, %c0_13] : memref<128x128xf32, #tpu.memory_space<vmem>>, vector<128x128xf32>
    %cst_14 = arith.constant dense<0.000000e+00> : vector<128x128xf32>
    %16 = tpu.matmul %14, %15, %cst_14 {dimension_numbers = #tpu.dot_dimension_numbers<[1], [0], [0], [1], [0, 0, 1, 1], [], []>} : vector<128x128xf32>, vector<128x128xf32>, vector<128x128xf32> -> vector<128x128xf32>
    %c0_15 = arith.constant 0 : index
    %c0_16 = arith.constant 0 : index
    %17 = vector.load %arg7[%c0_15, %c0_16] : memref<1x128xf32, #tpu.memory_space<vmem>>, vector<1x128xf32>
    %18 = vector.broadcast %17 : vector<1x128xf32> to vector<128x128xf32>
    %19 = arith.addf %16, %18 : vector<128x128xf32>
    %c0_17 = arith.constant 0 : index
    %c0_18 = arith.constant 0 : index
    %20 = vector.load %arg8[%c0_17, %c0_18] : memref<128x128xf32, #tpu.memory_space<vmem>>, vector<128x128xf32>
    tpu.vector_store %arg8[%c0_17, %c0_18], %19 {strides = array<i32>} : memref<128x128xf32, #tpu.memory_space<vmem>>, vector<128x128xf32>,
    return
  }
  func.func @transform_0(%arg0: i32) -> (i32, i32) {
    %c0_i32 = arith.constant 0 : i32
    %c0_i32_0 = arith.constant 0 : i32
    return %arg0, %c0_i32 : i32, i32
  }
  func.func @transform_1(%arg0: i32) -> (i32, i32) {
    %c0_i32 = arith.constant 0 : i32
    %c0_i32_0 = arith.constant 0 : i32
    %c0_i32_1 = arith.constant 0 : i32
    return %c0_i32, %c0_i32_0 : i32, i32
  }
  func.func @transform_2(%arg0: i32) -> (i32, i32) {
    %c0_i32 = arith.constant 0 : i32
    %c0_i32_0 = arith.constant 0 : i32
    %c0_i32_1 = arith.constant 0 : i32
    return %c0_i32, %c0_i32_0 : i32, i32
  }
  func.func @transform_3(%arg0: i32) -> (i32, i32) {
    %c0_i32 = arith.constant 0 : i32
    %c0_i32_0 = arith.constant 0 : i32
    %c0_i32_1 = arith.constant 0 : i32
    return %c0_i32, %c0_i32_0 : i32, i32
  }
  func.func @transform_4(%arg0: i32) -> (i32, i32) {
    %c0_i32 = arith.constant 0 : i32
    %c0_i32_0 = arith.constant 0 : i32
    %c0_i32_1 = arith.constant 0 : i32
    return %c0_i32, %c0_i32_0 : i32, i32
  }
  func.func @transform_5(%arg0: i32) -> (i32, i32) {
    %c0_i32 = arith.constant 0 : i32
    %c0_i32_0 = arith.constant 0 : i32
    %c0_i32_1 = arith.constant 0 : i32
    return %c0_i32, %c0_i32_0 : i32, i32
  }
  func.func @transform_6(%arg0: i32) -> (i32, i32) {
    %c0_i32 = arith.constant 0 : i32
    %c0_i32_0 = arith.constant 0 : i32
    %c0_i32_1 = arith.constant 0 : i32
    return %c0_i32, %c0_i32_0 : i32, i32
  }
  func.func @transform_7(%arg0: i32) -> (i32, i32) {
    %c0_i32 = arith.constant 0 : i32
    %c0_i32_0 = arith.constant 0 : i32
    return %arg0, %c0_i32 : i32, i32
  }
}

</mosaic_0001>

<bundles_post_ra>
// kernel: simple_nn_forward.1
= control target key start
LH: loop header
LB: loop body
LE: loop exit
PB: predicated region body
PF: predicated region fallthrough
CT: control target
= control target key end

     0   :  { %s775_s24 = smov 0   ;;  %s1006_s0 = inlined_call_operand.vmem [shape: f32[256,128], index: 0, kind: input, shape index: {}]   ;;  %s1007_s1 = inlined_call_operand.vmem [shape: f32[128,128], index: 1, kind: input, shape index: {}]   ;;  %s1008_s2 = inlined_call_operand.vmem [shape: f32[1,128], index: 2, kind: input, shape index: {}]   ;;  %s1009_s3 = inlined_call_operand.vmem [shape: f32[128,128], index: 3, kind: input, shape index: {}]   ;;  %s1010_s4 = inlined_call_operand.vmem [shape: f32[1,128], index: 4, kind: input, shape index: {}]   ;;  %s1011_s5 = inlined_call_operand.vmem [shape: f32[128,128], index: 5, kind: input, shape index: {}]   ;;  %s1012_s6 = inlined_call_operand.vmem [shape: f32[1,128], index: 6, kind: input, shape index: {}]   ;;  %s1013_s7 = inlined_call_operand.vmem [shape: f32[256,128], index: 7, kind: output, shape index: {}]  }
   0x1 LB: > { %s657_s25 = sadd.s32 4294967295, %s733_s24   ;;  %p661_p0 = scmp.ge.s32.totalorder %s733_s24, 1  ;;  %s733_s24 = sphi %s775_s24, %s17_s24  }
   0x2   : > { %p238_p1 = scmp.lt.s32.totalorder %s733_s24, 3 }
   0x4   : > { %p239_p2 = pnand %p661_p0, %p238_p1 }
   0x5   : > { %s662_s19 = sshll.u32 (!%p239_p2), %s657_s25, 4 }
   0x6   : > { %242 = sbr.rel (%p239_p2) target bundleno = 526 (0x20e), region = 48  ;;  %p271_p3 = scmp.lt.s32.totalorder (!%p239_p2), %s662_s19, 31 }
   0xb   : > { %v313_v0 = vld [vmem:[%s1007_s1 + $0x78] sm:$0xff]  ;;  %v312_v1 = vld [vmem:[%s1007_s1 + $0x70] sm:$0xff]  ;;  %v311_v2 = vld [vmem:[%s1007_s1 + $0x68] sm:$0xff]  ;;  %s1015_s19 = smov (!%p271_p3, %s662_s19), 31 }
   0xc   : > { %318 = vmatpush.msra.mxu0 %v313_v0  ;;  %668 = vmatpush.msra.mxu3 %v313_v0  ;;  %v310_v3 = vld [vmem:[%s1007_s1 + $0x60] sm:$0xff]  ;;  %v309_v4 = vld [vmem:[%s1007_s1 + $0x58] sm:$0xff]  ;;  %v308_v5 = vld [vmem:[%s1007_s1 + $0x50] sm:$0xff]  ;;  %s663_s8 = sshll.u32 %s1015_s19, 3 }
   0xd   : > { %v307_v6 = vld [vmem:[%s1007_s1 + $0x48] sm:$0xff]  ;;  %v306_v7 = vld [vmem:[%s1007_s1 + $0x40] sm:$0xff]  ;;  %v305_v8 = vld [vmem:[%s1007_s1 + $0x38] sm:$0xff]  ;;  %s836_s15 = scalar_lea.vmem %s1006_s0, %s663_s8 }
   0xe   : > { %319 = vmatpush.msra.mxu0 %v312_v1  ;;  %669 = vmatpush.msra.mxu3 %v312_v1  ;;  %v304_v9 = vld [vmem:[%s1007_s1 + $0x30] sm:$0xff]  ;;  %v303_v10 = vld [vmem:[%s1007_s1 + $0x28] sm:$0xff]  ;;  %v302_v11 = vld [vmem:[%s1007_s1 + $0x20] sm:$0xff] }
   0xf   : > { %v301_v12 = vld [vmem:[%s1007_s1 + $0x18] sm:$0xff]  ;;  %v300_v13 = vld [vmem:[%s1007_s1 + $0x10] sm:$0xff]  ;;  %v299_v14 = vld [vmem:[%s1007_s1 + $0x8] sm:$0xff] }
  0x10   : > { %320 = vmatpush.msra.mxu0 %v311_v2  ;;  %670 = vmatpush.msra.mxu3 %v311_v2  ;;  %v298_v15 = vld [vmem:[%s1007_s1] sm:$0xff]  ;;  %v283_v17 = vld [vmem:[%s836_s15 + $0x8] sm:$0xff]  ;;  %v284_v18 = vld [vmem:[%s836_s15 + $0x10] sm:$0xff] }
  0x11   : > { %v282_v16 = vld [vmem:[%s836_s15] sm:$0xff]  ;;  %v285_v20 = vld [vmem:[%s836_s15 + $0x18] sm:$0xff]  ;;  %v295_v21 = vld [vmem:[%s836_s15 + $0x68] sm:$0xff] }
  0x12   : > { %321 = vmatpush.msra.mxu0 %v310_v3  ;;  %671 = vmatpush.msra.mxu3 %v310_v3  ;;  %v294_v19 = vld [vmem:[%s836_s15 + $0x60] sm:$0xff]  ;;  %v296_v23 = vld [vmem:[%s836_s15 + $0x70] sm:$0xff]  ;;  %v287_v24 = vld [vmem:[%s836_s15 + $0x28] sm:$0xff] }
  0x13   : > { %v286_v22 = vld [vmem:[%s836_s15 + $0x20] sm:$0xff]  ;;  %v297_v25 = vld [vmem:[%s836_s15 + $0x78] sm:$0xff]  ;;  %v288_v26 = vld [vmem:[%s836_s15 + $0x30] sm:$0xff] }
  0x14   : > { %322 = vmatpush.msra.mxu0 %v309_v4  ;;  %672 = vmatpush.msra.mxu3 %v309_v4  ;;  %v289_v27 = vld [vmem:[%s836_s15 + $0x38] sm:$0xff]  ;;  %v413_v29 = vld [vmem:[%s1009_s3 + $0x70] sm:$0xff]  ;;  %v412_v30 = vld [vmem:[%s1009_s3 + $0x68] sm:$0xff] }
  0x15   : > { %v414_v28 = vld [vmem:[%s1009_s3 + $0x78] sm:$0xff]  ;;  %v411_v31 = vld [vmem:[%s1009_s3 + $0x60] sm:$0xff]  ;;  %v409_v34 = vld [vmem:[%s1009_s3 + $0x50] sm:$0xff] }
  0x16   : > { %323 = vmatpush.msra.mxu0 %v308_v5  ;;  %673 = vmatpush.msra.mxu3 %v308_v5  ;;  %v290_v32 = vld [vmem:[%s836_s15 + $0x40] sm:$0xff]  ;;  %v410_v33 = vld [vmem:[%s1009_s3 + $0x58] sm:$0xff]  ;;  %v408_v35 = vld [vmem:[%s1009_s3 + $0x48] sm:$0xff] }
  0x17   : > { %419 = vmatpush.msra.mxu1 %v414_v28  ;;  %v407_v36 = vld [vmem:[%s1009_s3 + $0x40] sm:$0xff]  ;;  %v291_v37 = vld [vmem:[%s836_s15 + $0x48] sm:$0xff]  ;;  %v406_v38 = vld [vmem:[%s1009_s3 + $0x38] sm:$0xff] }
  0x18   : > { %324 = vmatpush.msra.mxu0 %v307_v6  ;;  %674 = vmatpush.msra.mxu3 %v307_v6  ;;  %v405_v39 = vld [vmem:[%s1009_s3 + $0x30] sm:$0xff]  ;;  %v404_v40 = vld [vmem:[%s1009_s3 + $0x28] sm:$0xff]  ;;  %v403_v41 = vld [vmem:[%s1009_s3 + $0x20] sm:$0xff] }
  0x19   : > { %420 = vmatpush.msra.mxu1 %v413_v29  ;;  %v292_v42 = vld [vmem:[%s836_s15 + $0x50] sm:$0xff]  ;;  %v402_v43 = vld [vmem:[%s1009_s3 + $0x18] sm:$0xff]  ;;  %v400_v46 = vld [vmem:[%s1009_s3 + $0x8] sm:$0xff] }
  0x1a   : > { %325 = vmatpush.msra.mxu0 %v306_v7  ;;  %675 = vmatpush.msra.mxu3 %v306_v7  ;;  %v293_v44 = vld [vmem:[%s836_s15 + $0x58] sm:$0xff]  ;;  %v401_v45 = vld [vmem:[%s1009_s3 + $0x10] sm:$0xff]  ;;  %v399_v47 = vld [vmem:[%s1009_s3] sm:$0xff]  ;;  %s985_s15 = scalar_lea.vmem %s1013_s7, %s663_s8 }
  0x1b   : > { %421 = vmatpush.msra.mxu1 %v412_v30  ;;  %v908_v48 = vld [vmem:[%s1008_s2] ss:$0 sm:$0xff] }
  0x1c   : > { %326 = vmatpush.msra.mxu0 %v305_v8  ;;  %676 = vmatpush.msra.mxu3 %v305_v8 }
  0x1d   : > { %422 = vmatpush.msra.mxu1 %v411_v31 }
  0x1e   : > { %327 = vmatpush.msra.mxu0 %v304_v9  ;;  %677 = vmatpush.msra.mxu3 %v304_v9 }
  0x1f   : > { %423 = vmatpush.msra.mxu1 %v410_v33 }
  0x20   : > { %328 = vmatpush.msra.mxu0 %v303_v10  ;;  %678 = vmatpush.msra.mxu3 %v303_v10 }
  0x21   : > { %424 = vmatpush.msra.mxu1 %v409_v34 }
  0x22   : > { %329 = vmatpush.msra.mxu0 %v302_v11  ;;  %679 = vmatpush.msra.mxu3 %v302_v11 }
  0x23   : > { %425 = vmatpush.msra.mxu1 %v408_v35 }
  0x24   : > { %330 = vmatpush.msra.mxu0 %v301_v12  ;;  %680 = vmatpush.msra.mxu3 %v301_v12 }
  0x25   : > { %426 = vmatpush.msra.mxu1 %v407_v36 }
  0x26   : > { %331 = vmatpush.msra.mxu0 %v300_v13  ;;  %681 = vmatpush.msra.mxu3 %v300_v13 }
  0x27   : > { %427 = vmatpush.msra.mxu1 %v406_v38 }
  0x28   : > { %332 = vmatpush.msra.mxu0 %v299_v14  ;;  %682 = vmatpush.msra.mxu3 %v299_v14 }
  0x29   : > { %428 = vmatpush.msra.mxu1 %v405_v39 }
  0x2a   : > { %333 = vmatpush.msra.mxu0 %v298_v15  ;;  %683 = vmatpush.msra.mxu3 %v298_v15 }
  0x2b   : > { %334 = vmatmul.f32.vlgmr.msra.gmra.mxu0 %v282_v16  ;;  %370 = vmatmul.f32.vlgmr.msra.gmra.mxu3 %v294_v19 }
  0x2c   : > { %684 = vmatpush.msrb.mxu3 %v414_v28  ;;  %429 = vmatpush.msra.mxu1 %v404_v40  ;;  %v511_v28 = vld [vmem:[%s1011_s5 + $0x58] sm:$0xff] }
  0x2e   : > { %685 = vmatpush.msrb.mxu3 %v413_v29  ;;  %430 = vmatpush.msra.mxu1 %v403_v41  ;;  %v510_v29 = vld [vmem:[%s1011_s5 + $0x50] sm:$0xff] }
  0x30   : > { %686 = vmatpush.msrb.mxu3 %v412_v30  ;;  %431 = vmatpush.msra.mxu1 %v402_v43  ;;  %v509_v30 = vld [vmem:[%s1011_s5 + $0x48] sm:$0xff] }
  0x32   : > { %687 = vmatpush.msrb.mxu3 %v411_v31  ;;  %432 = vmatpush.msra.mxu1 %v401_v45 }
  0x33   : > { %337 = vmatmul.f32.gmra.mxu0 %v283_v17  ;;  %373 = vmatmul.f32.gmra.mxu3 %v295_v21  ;;  %v515_v21 = vld [vmem:[%s1011_s5 + $0x78] sm:$0xff] }
  0x34   : > { %688 = vmatpush.msrb.mxu3 %v410_v33  ;;  %433 = vmatpush.msra.mxu1 %v400_v46  ;;  %v508_v33 = vld [vmem:[%s1011_s5 + $0x40] sm:$0xff] }
  0x35   : > { %520 = vmatpush.msra.mxu2 %v515_v21 }
  0x36   : > { %689 = vmatpush.msrb.mxu3 %v409_v34  ;;  %434 = vmatpush.msra.mxu1 %v399_v47 }
  0x38   : > { %690 = vmatpush.msrb.mxu3 %v408_v35  ;;  %v507_v35 = vld [vmem:[%s1011_s5 + $0x38] sm:$0xff] }
  0x3a   : > { %691 = vmatpush.msrb.mxu3 %v407_v36  ;;  %v506_v36 = vld [vmem:[%s1011_s5 + $0x30] sm:$0xff] }
  0x3b   : > { %340 = vmatmul.f32.gmra.mxu0 %v284_v18  ;;  %376 = vmatmul.f32.gmra.mxu3 %v296_v23  ;;  %v513_v23 = vld [vmem:[%s1011_s5 + $0x68] sm:$0xff] }
  0x3c   : > { %692 = vmatpush.msrb.mxu3 %v406_v38 }
  0x3e   : > { %693 = vmatpush.msrb.mxu3 %v405_v39 }
  0x40   : > { %694 = vmatpush.msrb.mxu3 %v404_v40  ;;  %v504_v40 = vld [vmem:[%s1011_s5 + $0x20] sm:$0xff] }
  0x42   : > { %695 = vmatpush.msrb.mxu3 %v403_v41 }
  0x43   : > { %343 = vmatmul.f32.gmra.mxu0 %v285_v20  ;;  %379 = vmatmul.f32.gmra.mxu3 %v297_v25 }
  0x44   : > { %696 = vmatpush.msrb.mxu3 %v402_v43 }
  0x46   : > { %697 = vmatpush.msrb.mxu3 %v401_v45 }
  0x48   : > { %698 = vmatpush.msrb.mxu3 %v400_v46  ;;  %v502_v46 = vld [vmem:[%s1011_s5 + $0x10] sm:$0xff] }
  0x4a   : > { %699 = vmatpush.msrb.mxu3 %v399_v47  ;;  %v501_v47 = vld [vmem:[%s1011_s5 + $0x8] sm:$0xff] }
  0x4b   : > { %346 = vmatmul.f32.gmra.mxu0 %v286_v22  ;;  %v514_v22 = vld [vmem:[%s1011_s5 + $0x70] sm:$0xff] }
  0x4c   : > { %700 = vmatpush.msra.mxu3 %v515_v21  ;;  %521 = vmatpush.msra.mxu2 %v514_v22 }
  0x4e   : > { %701 = vmatpush.msra.mxu3 %v514_v22  ;;  %522 = vmatpush.msra.mxu2 %v513_v23 }
  0x50   : > { %702 = vmatpush.msra.mxu3 %v513_v23 }
  0x53   : > { %349 = vmatmul.f32.gmra.mxu0 %v287_v24 }
  0x5b   : > { %352 = vmatmul.f32.gmra.mxu0 %v288_v26  ;;  %v512_v26 = vld [vmem:[%s1011_s5 + $0x60] sm:$0xff] }
  0x5c   : > { %523 = vmatpush.msra.mxu2 %v512_v26  ;;  %703 = vmatpush.msra.mxu3 %v512_v26 }
  0x5e   : > { %524 = vmatpush.msra.mxu2 %v511_v28  ;;  %704 = vmatpush.msra.mxu3 %v511_v28 }
  0x60   : > { %525 = vmatpush.msra.mxu2 %v510_v29  ;;  %705 = vmatpush.msra.mxu3 %v510_v29 }
  0x62   : > { %526 = vmatpush.msra.mxu2 %v509_v30  ;;  %706 = vmatpush.msra.mxu3 %v509_v30 }
  0x63   : > { %355 = vmatmul.f32.gmra.mxu0 %v289_v27 }
  0x64   : > { %527 = vmatpush.msra.mxu2 %v508_v33  ;;  %707 = vmatpush.msra.mxu3 %v508_v33 }
  0x66   : > { %528 = vmatpush.msra.mxu2 %v507_v35  ;;  %708 = vmatpush.msra.mxu3 %v507_v35 }
  0x68   : > { %529 = vmatpush.msra.mxu2 %v506_v36  ;;  %709 = vmatpush.msra.mxu3 %v506_v36 }
  0x6b   : > { %358 = vmatmul.f32.gmra.mxu0 %v290_v32 }
  0x73   : > { %361 = vmatmul.f32.gmra.mxu0 %v291_v37  ;;  %v505_v37 = vld [vmem:[%s1011_s5 + $0x28] sm:$0xff] }
  0x74   : > { %530 = vmatpush.msra.mxu2 %v505_v37  ;;  %710 = vmatpush.msra.mxu3 %v505_v37 }
  0x76   : > { %531 = vmatpush.msra.mxu2 %v504_v40  ;;  %711 = vmatpush.msra.mxu3 %v504_v40 }
  0x7b   : > { %364 = vmatmul.f32.gmra.mxu0 %v292_v42  ;;  %v503_v42 = vld [vmem:[%s1011_s5 + $0x18] sm:$0xff] }
  0x7c   : > { %532 = vmatpush.msra.mxu2 %v503_v42  ;;  %712 = vmatpush.msra.mxu3 %v503_v42 }
  0x7e   : > { %533 = vmatpush.msra.mxu2 %v502_v46  ;;  %713 = vmatpush.msra.mxu3 %v502_v46 }
  0x80   : > { %534 = vmatpush.msra.mxu2 %v501_v47  ;;  %714 = vmatpush.msra.mxu3 %v501_v47 }
  0x83   : > { %367 = vmatmul.f32.gmra.mxu0 %v293_v44 }
  0xa8   : > { %v335_v49 = vpop.f32.mrf.mxu0 }
  0xa9   : > { %v336_v50 = vadd.f32 %v908_v48, %v335_v49  ;;  %v500_v49 = vld [vmem:[%s1011_s5] sm:$0xff] }
  0xaa   : > { %535 = vmatpush.msra.mxu2 %v500_v49  ;;  %715 = vmatpush.msra.mxu3 %v500_v49 }
  0xab   : > { %v383_v51 = vmax.f32 %v336_v50, 0.0 }
  0xad   : > { %435 = vmatmul.f32.vlgmr.msra.gmra.mxu1 %v383_v51 }
  0xae   : > { %v371_v60 = vpop.f32.mrf.mxu3 }
  0xaf   : > { %v372_v62 = vadd.f32 %v908_v48, %v371_v60 }
  0xb0   : > { %v338_v52 = vpop.f32.mrf.mxu0 }
  0xb1   : > { %v339_v53 = vadd.f32 %v908_v48, %v338_v52  ;;  %v395_v63 = vmax.f32 %v372_v62, 0.0 }
  0xb3   : > { %v384_v54 = vmax.f32 %v339_v53, 0.0  ;;  %471 = vmatmul.f32.vlgmr.msrb.gmra.mxu3 %v395_v63 }
  0xb5   : > { %438 = vmatmul.f32.gmra.mxu1 %v384_v54 }
  0xb6   : > { %v374_v2 = vpop.f32.mrf.mxu3 }
  0xb7   : > { %v375_v4 = vadd.f32 %v908_v48, %v374_v2 }
  0xb8   : > { %v341_v55 = vpop.f32.mrf.mxu0 }
  0xb9   : > { %v342_v56 = vadd.f32 %v908_v48, %v341_v55  ;;  %v396_v5 = vmax.f32 %v375_v4, 0.0 }
  0xbb   : > { %v385_v57 = vmax.f32 %v342_v56, 0.0  ;;  %474 = vmatmul.f32.gmra.mxu3 %v396_v5 }
  0xbd   : > { %441 = vmatmul.f32.gmra.mxu1 %v385_v57 }
  0xbe   : > { %v377_v8 = vpop.f32.mrf.mxu3 }
  0xbf   : > { %v378_v10 = vadd.f32 %v908_v48, %v377_v8 }
  0xc0   : > { %v344_v58 = vpop.f32.mrf.mxu0 }
  0xc1   : > { %v345_v59 = vadd.f32 %v908_v48, %v344_v58  ;;  %v397_v11 = vmax.f32 %v378_v10, 0.0 }
  0xc3   : > { %v386_v61 = vmax.f32 %v345_v59, 0.0  ;;  %477 = vmatmul.f32.gmra.mxu3 %v397_v11 }
  0xc5   : > { %444 = vmatmul.f32.gmra.mxu1 %v386_v61 }
  0xc6   : > { %v380_v14 = vpop.f32.mrf.mxu3 }
  0xc7   : > { %v381_v16 = vadd.f32 %v908_v48, %v380_v14 }
  0xc8   : > { %v347_v0 = vpop.f32.mrf.mxu0 }
  0xc9   : > { %v348_v1 = vadd.f32 %v908_v48, %v347_v0  ;;  %v398_v17 = vmax.f32 %v381_v16, 0.0 }
  0xcb   : > { %v387_v3 = vmax.f32 %v348_v1, 0.0  ;;  %480 = vmatmul.f32.gmra.mxu3 %v398_v17 }
  0xcd   : > { %447 = vmatmul.f32.gmra.mxu1 %v387_v3 }
  0xd0   : > { %v350_v6 = vpop.f32.mrf.mxu0 }
  0xd1   : > { %v351_v7 = vadd.f32 %v908_v48, %v350_v6 }
  0xd3   : > { %v388_v9 = vmax.f32 %v351_v7, 0.0 }
  0xd5   : > { %450 = vmatmul.f32.gmra.mxu1 %v388_v9 }
  0xd8   : > { %v353_v12 = vpop.f32.mrf.mxu0 }
  0xd9   : > { %v354_v13 = vadd.f32 %v908_v48, %v353_v12 }
  0xdb   : > { %v389_v15 = vmax.f32 %v354_v13, 0.0 }
  0xdd   : > { %453 = vmatmul.f32.gmra.mxu1 %v389_v15 }
  0xe0   : > { %v356_v18 = vpop.f32.mrf.mxu0 }
  0xe1   : > { %v357_v19 = vadd.f32 %v908_v48, %v356_v18 }
  0xe3   : > { %v390_v20 = vmax.f32 %v357_v19, 0.0 }
  0xe5   : > { %456 = vmatmul.f32.gmra.mxu1 %v390_v20 }
  0xe8   : > { %v359_v24 = vpop.f32.mrf.mxu0 }
  0xe9   : > { %v360_v25 = vadd.f32 %v908_v48, %v359_v24 }
  0xeb   : > { %v391_v27 = vmax.f32 %v360_v25, 0.0 }
  0xed   : > { %459 = vmatmul.f32.gmra.mxu1 %v391_v27 }
  0xf0   : > { %v362_v31 = vpop.f32.mrf.mxu0 }
  0xf1   : > { %v363_v32 = vadd.f32 %v908_v48, %v362_v31 }
  0xf3   : > { %v392_v34 = vmax.f32 %v363_v32, 0.0 }
  0xf5   : > { %462 = vmatmul.f32.gmra.mxu1 %v392_v34  ;;  %v726_v34 = vld [vmem:[%s1012_s6] ss:$0 sm:$0xff] }
  0xf8   : > { %v365_v38 = vpop.f32.mrf.mxu0 }
  0xf9   : > { %v366_v39 = vadd.f32 %v908_v48, %v365_v38 }
  0xfb   : > { %v393_v41 = vmax.f32 %v366_v39, 0.0 }
  0xfd   : > { %465 = vmatmul.f32.gmra.mxu1 %v393_v41 }
 0x100   : > { %v368_v43 = vpop.f32.mrf.mxu0 }
 0x101   : > { %v369_v44 = vadd.f32 %v908_v48, %v368_v43  ;;  %v725_v48 = vld [vmem:[%s1010_s4] ss:$0 sm:$0xff] }
 0x103   : > { %v394_v45 = vmax.f32 %v369_v44, 0.0 }
 0x105   : > { %468 = vmatmul.f32.gmra.mxu1 %v394_v45 }
 0x12a   : > { %v436_v50 = vpop.f32.mrf.mxu1 }
 0x12b   : > { %v437_v51 = vadd.f32 %v725_v48, %v436_v50 }
 0x12d   : > { %v484_v52 = vmax.f32 %v437_v51, 0.0 }
 0x12f   : > { %536 = vmatmul.f32.vlgmr.msra.gmra.mxu2 %v484_v52 }
 0x132   : > { %v439_v53 = vpop.f32.mrf.mxu1 }
 0x133   : > { %v440_v54 = vadd.f32 %v725_v48, %v439_v53 }
 0x135   : > { %v485_v55 = vmax.f32 %v440_v54, 0.0 }
 0x136   : > { %v472_v63 = vpop.f32.mrf.mxu3 }
 0x137   : > { %539 = vmatmul.f32.gmra.mxu2 %v485_v55  ;;  %v473_v1 = vadd.f32 %v725_v48, %v472_v63 }
 0x139   : > { %v496_v3 = vmax.f32 %v473_v1, 0.0 }
 0x13a   : > { %v442_v56 = vpop.f32.mrf.mxu1 }
 0x13b   : > { %v443_v57 = vadd.f32 %v725_v48, %v442_v56  ;;  %572 = vmatmul.f32.vlgmr.msra.gmra.mxu3 %v496_v3 }
 0x13d   : > { %v486_v58 = vmax.f32 %v443_v57, 0.0 }
 0x13e   : > { %v475_v5 = vpop.f32.mrf.mxu3 }
 0x13f   : > { %542 = vmatmul.f32.gmra.mxu2 %v486_v58  ;;  %v476_v7 = vadd.f32 %v725_v48, %v475_v5 }
 0x141   : > { %v497_v9 = vmax.f32 %v476_v7, 0.0 }
 0x142   : > { %v445_v59 = vpop.f32.mrf.mxu1 }
 0x143   : > { %v446_v60 = vadd.f32 %v725_v48, %v445_v59  ;;  %575 = vmatmul.f32.gmra.mxu3 %v497_v9 }
 0x145   : > { %v487_v61 = vmax.f32 %v446_v60, 0.0 }
 0x146   : > { %v478_v11 = vpop.f32.mrf.mxu3 }
 0x147   : > { %545 = vmatmul.f32.gmra.mxu2 %v487_v61  ;;  %v479_v13 = vadd.f32 %v725_v48, %v478_v11 }
 0x149   : > { %v498_v15 = vmax.f32 %v479_v13, 0.0 }
 0x14a   : > { %v448_v62 = vpop.f32.mrf.mxu1 }
 0x14b   : > { %v449_v0 = vadd.f32 %v725_v48, %v448_v62  ;;  %578 = vmatmul.f32.gmra.mxu3 %v498_v15 }
 0x14d   : > { %v488_v2 = vmax.f32 %v449_v0, 0.0 }
 0x14e   : > { %v481_v17 = vpop.f32.mrf.mxu3 }
 0x14f   : > { %548 = vmatmul.f32.gmra.mxu2 %v488_v2  ;;  %v482_v19 = vadd.f32 %v725_v48, %v481_v17 }
 0x151   : > { %v499_v21 = vmax.f32 %v482_v19, 0.0 }
 0x152   : > { %v451_v4 = vpop.f32.mrf.mxu1 }
 0x153   : > { %v452_v6 = vadd.f32 %v725_v48, %v451_v4  ;;  %581 = vmatmul.f32.gmra.mxu3 %v499_v21 }
 0x155   : > { %v489_v8 = vmax.f32 %v452_v6, 0.0 }
 0x157   : > { %551 = vmatmul.f32.gmra.mxu2 %v489_v8 }
 0x15a   : > { %v454_v10 = vpop.f32.mrf.mxu1 }
 0x15b   : > { %v455_v12 = vadd.f32 %v725_v48, %v454_v10 }
 0x15d   : > { %v490_v14 = vmax.f32 %v455_v12, 0.0 }
 0x15f   : > { %554 = vmatmul.f32.gmra.mxu2 %v490_v14 }
 0x162   : > { %v457_v16 = vpop.f32.mrf.mxu1 }
 0x163   : > { %v458_v18 = vadd.f32 %v725_v48, %v457_v16 }
 0x165   : > { %v491_v20 = vmax.f32 %v458_v18, 0.0 }
 0x167   : > { %557 = vmatmul.f32.gmra.mxu2 %v491_v20 }
 0x16a   : > { %v460_v22 = vpop.f32.mrf.mxu1 }
 0x16b   : > { %v461_v23 = vadd.f32 %v725_v48, %v460_v22 }
 0x16d   : > { %v492_v24 = vmax.f32 %v461_v23, 0.0 }
 0x16f   : > { %560 = vmatmul.f32.gmra.mxu2 %v492_v24 }
 0x172   : > { %v463_v25 = vpop.f32.mrf.mxu1 }
 0x173   : > { %v464_v26 = vadd.f32 %v725_v48, %v463_v25 }
 0x175   : > { %v493_v27 = vmax.f32 %v464_v26, 0.0 }
 0x177   : > { %563 = vmatmul.f32.gmra.mxu2 %v493_v27 }
 0x17a   : > { %v466_v28 = vpop.f32.mrf.mxu1 }
 0x17b   : > { %v467_v29 = vadd.f32 %v725_v48, %v466_v28 }
 0x17d   : > { %v494_v30 = vmax.f32 %v467_v29, 0.0 }
 0x17f   : > { %566 = vmatmul.f32.gmra.mxu2 %v494_v30 }
 0x182   : > { %v469_v31 = vpop.f32.mrf.mxu1 }
 0x183   : > { %v470_v32 = vadd.f32 %v725_v48, %v469_v31 }
 0x185   : > { %v495_v33 = vmax.f32 %v470_v32, 0.0 }
 0x187   : > { %569 = vmatmul.f32.gmra.mxu2 %v495_v33 }
 0x1b2   : > { %v537_v35 = vpop.f32.mrf.mxu2 }
 0x1b3   : > { %v538_v36 = vadd.f32 %v726_v34, %v537_v35 }
 0x1b5   : > { %585 = vst [vmem:[%s985_s15] sm:$0xff] %v538_v36 }
 0x1ba   : > { %v540_v37 = vpop.f32.mrf.mxu2 }
 0x1bb   : > { %v541_v38 = vadd.f32 %v726_v34, %v540_v37 }
 0x1bd   : > { %586 = vst [vmem:[%s985_s15 + $0x8] sm:$0xff] %v541_v38 }
 0x1be   : > { %v573_v44 = vpop.f32.mrf.mxu3 }
 0x1bf   : > { %v574_v46 = vadd.f32 %v726_v34, %v573_v44 }
 0x1c1   : > { %597 = vst [vmem:[%s985_s15 + $0x60] sm:$0xff] %v574_v46 }
 0x1c2   : > { %v543_v39 = vpop.f32.mrf.mxu2 }
 0x1c3   : > { %v544_v40 = vadd.f32 %v726_v34, %v543_v39 }
 0x1c5   : > { %587 = vst [vmem:[%s985_s15 + $0x10] sm:$0xff] %v544_v40 }
 0x1c6   : > { %v576_v49 = vpop.f32.mrf.mxu3 }
 0x1c7   : > { %v577_v50 = vadd.f32 %v726_v34, %v576_v49 }
 0x1c9   : > { %598 = vst [vmem:[%s985_s15 + $0x68] sm:$0xff] %v577_v50 }
 0x1ca   : > { %v546_v41 = vpop.f32.mrf.mxu2 }
 0x1cb   : > { %v547_v42 = vadd.f32 %v726_v34, %v546_v41 }
 0x1cd   : > { %588 = vst [vmem:[%s985_s15 + $0x18] sm:$0xff] %v547_v42 }
 0x1ce   : > { %v579_v52 = vpop.f32.mrf.mxu3 }
 0x1cf   : > { %v580_v54 = vadd.f32 %v726_v34, %v579_v52 }
 0x1d1   : > { %599 = vst [vmem:[%s985_s15 + $0x70] sm:$0xff] %v580_v54 }
 0x1d2   : > { %v549_v43 = vpop.f32.mrf.mxu2 }
 0x1d3   : > { %v550_v45 = vadd.f32 %v726_v34, %v549_v43 }
 0x1d5   : > { %589 = vst [vmem:[%s985_s15 + $0x20] sm:$0xff] %v550_v45 }
 0x1d6   : > { %v582_v56 = vpop.f32.mrf.mxu3 }
 0x1d7   : > { %v583_v58 = vadd.f32 %v726_v34, %v582_v56 }
 0x1d9   : > { %600 = vst [vmem:[%s985_s15 + $0x78] sm:$0xff] %v583_v58 }
 0x1da   : > { %v552_v47 = vpop.f32.mrf.mxu2 }
 0x1db   : > { %v553_v48 = vadd.f32 %v726_v34, %v552_v47 }
 0x1dd   : > { %590 = vst [vmem:[%s985_s15 + $0x28] sm:$0xff] %v553_v48 }
 0x1e2   : > { %v555_v51 = vpop.f32.mrf.mxu2 }
 0x1e3   : > { %v556_v53 = vadd.f32 %v726_v34, %v555_v51 }
 0x1e5   : > { %591 = vst [vmem:[%s985_s15 + $0x30] sm:$0xff] %v556_v53 }
 0x1ea   : > { %v558_v55 = vpop.f32.mrf.mxu2 }
 0x1eb   : > { %v559_v57 = vadd.f32 %v726_v34, %v558_v55 }
 0x1ed   : > { %592 = vst [vmem:[%s985_s15 + $0x38] sm:$0xff] %v559_v57 }
 0x1f2   : > { %v561_v59 = vpop.f32.mrf.mxu2 }
 0x1f3   : > { %v562_v60 = vadd.f32 %v726_v34, %v561_v59 }
 0x1f5   : > { %593 = vst [vmem:[%s985_s15 + $0x40] sm:$0xff] %v562_v60 }
 0x1fa   : > { %v564_v61 = vpop.f32.mrf.mxu2 }
 0x1fb   : > { %v565_v62 = vadd.f32 %v726_v34, %v564_v61 }
 0x1fd   : > { %594 = vst [vmem:[%s985_s15 + $0x48] sm:$0xff] %v565_v62 }
 0x202   : > { %v567_v63 = vpop.f32.mrf.mxu2 }
 0x203   : > { %v568_v0 = vadd.f32 %v726_v34, %v567_v63 }
 0x205   : > { %595 = vst [vmem:[%s985_s15 + $0x50] sm:$0xff] %v568_v0 }
 0x20a   : > { %v570_v1 = vpop.f32.mrf.mxu2 }
 0x20b   : > { %v571_v2 = vadd.f32 %v726_v34, %v570_v1 }
 0x20d   : > { %596 = vst [vmem:[%s985_s15 + $0x58] sm:$0xff] %v571_v2 }
 0x20e PF: > { %s17_s24 = sadd.s32 1, %s733_s24  }
 0x20f   : > { %p14_p4 = scmp.ge.s32.totalorder %s17_s24, 4  }
 0x211   :  { %16 = sbr.rel (!%p14_p4) target bundleno = 1 (0x1), region = 78 }

</bundles_post_ra>
